<compile_context>
chip_gen: v7x
topology: tpu7x:2x2x1
jax: 0.10.0
libtpu: 0.0.40
codegen_flags: <defaults>
</compile_context>

<pallas_src>
import jax
import jax.numpy as jnp
from jax.experimental import pallas as pl
from jax.experimental.pallas import tpu as pltpu

_MIB = 1024 * 1024


def _round_up(x, m):
    return ((x + m - 1) // m) * m


def _vmem_capacity_bytes():
    """Physical VMEM of the current generation; conservative fallback (v7x)."""
    try:
        return int(pltpu.get_tpu_info().vmem_capacity_bytes)
    except Exception:
        return 64 * _MIB


def _footprint_bytes(tn, tk, batch, f_in_p, f_out_p, c_sz, out_sz, with_self):
    """Peak VMEM working set of one kernel instance (double buffers included)."""
    acc = tn * batch * f_in_p * 4                              # f32 scratch
    adj = 2 * tn * tk * c_sz                                   # double-buffered
    x_k = 2 * tk * batch * f_in_p * c_sz                       # double-buffered
    x_s = (2 * tn * batch * f_in_p * c_sz) if with_self else 0
    w = (2 if with_self else 1) * f_in_p * f_out_p * c_sz      # single-buffered
    bias = f_out_p * 4
    out = 2 * tn * batch * f_out_p * out_sz
    return acc + adj + x_k + x_s + w + bias + out


def _plan_tiles(n, max_tile, fits):
    """Pick a square tile T (node and contraction axes) and padded extent N_p.

    Small N -> one full-extent tile (always layout-legal).  Otherwise
    128-aligned tiles, halved until the VMEM footprint fits the budget, then
    trimmed to minimize zero padding of the adjacency.
    """
    small = _round_up(max(n, 8), 8)
    if n <= max_tile and (fits(small, small) or small <= 128):
        return small, small
    t = min(_round_up(max_tile, 128), 128 * pl.cdiv(n, 128))
    while t > 128 and not fits(t, t):
        t = _round_up(t // 2, 128)
    n_tiles = pl.cdiv(n, t)
    t = 128 * pl.cdiv(n, 128 * n_tiles)        # trim tile to reduce padding
    return t, t * n_tiles


def _make_kernel(batch, f_in_p, f_out_p, compute_dtype, with_self):
    """Fused aggregate + project kernel for a fixed static configuration."""

    def kernel(*refs):
        if with_self:
            adj_ref, x_ref, xs_ref, wn_ref, ws_ref, b_ref, o_ref, acc_ref = refs
        else:
            adj_ref, x_ref, wn_ref, b_ref, o_ref, acc_ref = refs
        k = pl.program_id(1)

        @pl.when(k == 0)
        def _():
            acc_ref[...] = jnp.zeros_like(acc_ref)

        # Main stream: (T, T) @ (T, B*F_in_p) on the MXU, f32 accumulation.
        acc_ref[...] += jnp.dot(adj_ref[...], x_ref[...],
                                preferred_element_type=jnp.float32)

        @pl.when(k == pl.num_programs(1) - 1)
        def _():
            bias = b_ref[...]            # (1, F_out_p), f32 epilogue (v5e-safe)
            wn = wn_ref[...]
            ws = ws_ref[...] if with_self else None
            # Per-batch projection on static, 128-aligned lane slices.
            # Two MXU matmuls (neighbor + self); no in-kernel concatenate.
            for b in range(batch):
                sl_in = slice(b * f_in_p, (b + 1) * f_in_p)
                sl_out = slice(b * f_out_p, (b + 1) * f_out_p)
                h = acc_ref[:, sl_in].astype(compute_dtype)
                o = jnp.dot(h, wn, preferred_element_type=jnp.float32)
                if with_self:
                    o = o + jnp.dot(xs_ref[:, sl_in], ws,
                                    preferred_element_type=jnp.float32)
                o_ref[:, sl_out] = (o + bias).astype(o_ref.dtype)

    return kernel


def batch_gcn_conv(x, adj, w_neigh, b_neigh=None, w_self=None, *,
                   compute_dtype=jnp.bfloat16, max_tile=None,
                   vmem_budget_bytes=None):
    """Pallas implementation of BatchGCNConv.forward.

    x:        [B, N, F_in]
    adj:      [N, N]           (dense adjacency, broadcast over batch)
    w_neigh:  [F_out, F_in]    (PyTorch nn.Linear layout)
    b_neigh:  [F_out] or None
    w_self:   optional [F_out, F_in]  (present iff gcn=False)
    compute_dtype: dtype fed to the MXU (default bfloat16); accumulation and
                   the bias epilogue stay f32.
    returns:  [B, N, F_out] in x.dtype
    """
    B, N, F_in = x.shape
    F_out = w_neigh.shape[0]
    assert adj.shape == (N, N), "adjacency must be (N, N), shared across batch"
    out_dtype = x.dtype
    compute_dtype = jnp.dtype(compute_dtype)
    with_self = w_self is not None
    if b_neigh is None:
        b_neigh = jnp.zeros((F_out,), dtype=jnp.float32)

    # Generation-aware tile / VMEM budgets: v5e/v6e (128 MiB VMEM) can take
    # 1024 tiles; v7x (64 MiB) stays at <=512 with a re-derived budget.
    capacity = _vmem_capacity_bytes()
    if vmem_budget_bytes is None:
        vmem_budget_bytes = int(0.70 * capacity)
    if max_tile is None:
        max_tile = 1024 if capacity >= 96 * _MIB else 512

    # Lane-dense padding of both feature dims.
    F_in_p = _round_up(F_in, 128)
    F_out_p = _round_up(F_out, 128)
    c_sz = compute_dtype.itemsize
    out_sz = jnp.dtype(out_dtype).itemsize

    def fits(tn, tk):
        return _footprint_bytes(tn, tk, B, F_in_p, F_out_p, c_sz, out_sz,
                                with_self) <= vmem_budget_bytes

    T, N_p = _plan_tiles(N, max_tile, fits)
    n_tiles = N_p // T

    # ---- one-time wrapper-side layout prep (plumbing only, no compute) ----
    # Fold batch into the lane width: x -> (N_p, B*F_in_p).
    x_p = jnp.pad(x, ((0, 0), (0, N_p - N), (0, F_in_p - F_in))).astype(compute_dtype)
    x_fold = x_p.transpose(1, 0, 2).reshape(N_p, B * F_in_p)
    adj_p = jnp.pad(adj, ((0, N_p - N), (0, N_p - N))).astype(compute_dtype)
    wn_t = jnp.pad(w_neigh, ((0, F_out_p - F_out), (0, F_in_p - F_in))).T.astype(compute_dtype)
    b_p = jnp.pad(b_neigh.astype(jnp.float32), (0, F_out_p - F_out)).reshape(1, F_out_p)
    if with_self:
        ws_t = jnp.pad(w_self, ((0, F_out_p - F_out), (0, F_in_p - F_in))).T.astype(compute_dtype)

    invariant = dict(pipeline_mode=pl.Buffered(1))       # grid-invariant operands
    adj_spec = pl.BlockSpec((T, T), lambda n, k: (n, k))
    x_spec = pl.BlockSpec((T, B * F_in_p), lambda n, k: (k, 0))
    w_spec = pl.BlockSpec((F_in_p, F_out_p), lambda n, k: (0, 0), **invariant)
    ws_spec = pl.BlockSpec((F_in_p, F_out_p), lambda n, k: (0, 0), **invariant)
    b_spec = pl.BlockSpec((1, F_out_p), lambda n, k: (0, 0), **invariant)
    out_spec = pl.BlockSpec((T, B * F_out_p), lambda n, k: (n, 0))

    if with_self:
        xs_spec = pl.BlockSpec((T, B * F_in_p), lambda n, k: (n, 0))
        in_specs = [adj_spec, x_spec, xs_spec, w_spec, ws_spec, b_spec]
        args = (adj_p, x_fold, x_fold, wn_t, ws_t, b_p)
    else:
        in_specs = [adj_spec, x_spec, w_spec, b_spec]
        args = (adj_p, x_fold, wn_t, b_p)

    kernel = _make_kernel(B, F_in_p, F_out_p, compute_dtype, with_self)

    # Advisory cost estimate counting the *actual* per-tile streams.
    n_w = 2 if with_self else 1
    flops = 2 * N_p * N_p * B * F_in_p + 2 * n_w * N_p * B * F_in_p * F_out_p
    bytes_accessed = int(
        N_p * N_p * c_sz                                   # adjacency: each tile once
        + n_tiles * N_p * B * F_in_p * c_sz                # x_fold: re-read per node tile
        + (N_p * B * F_in_p * c_sz if with_self else 0)    # self stream: once
        + n_w * F_in_p * F_out_p * c_sz + F_out_p * 4      # weights + bias
        + N_p * B * F_out_p * out_sz)                      # output

    footprint = _footprint_bytes(T, T, B, F_in_p, F_out_p, c_sz, out_sz, with_self)
    vmem_limit = int(min(max(footprint * 5 // 4 + 2 * _MIB, 32 * _MIB), 127 * _MIB))

    out_fold = pl.pallas_call(
        kernel,
        out_shape=jax.ShapeDtypeStruct((N_p, B * F_out_p), out_dtype),
        grid_spec=pltpu.PrefetchScalarGridSpec(
            num_scalar_prefetch=0,
            grid=(N_p // T, N_p // T),
            in_specs=in_specs,
            out_specs=out_spec,
            scratch_shapes=[pltpu.VMEM((T, B * F_in_p), jnp.float32)],
        ),
        compiler_params=pltpu.CompilerParams(
            dimension_semantics=("parallel", "arbitrary"),
            vmem_limit_bytes=vmem_limit,
        ),
        cost_estimate=pl.CostEstimate(flops=flops, transcendentals=0,
                                      bytes_accessed=bytes_accessed),
    )(*args)

    # Unfold (N_p, B*F_out_p) -> (B, N, F_out) and drop the zero padding.
    out = out_fold.reshape(N_p, B, F_out_p).transpose(1, 0, 2)
    return out[:, :N, :F_out]


def _reference(x, adj, w_neigh, b_neigh, w_self=None):
    out = jnp.einsum("nm,bmf->bnf", adj, x)
    out = jnp.einsum("bnf,of->bno", out, w_neigh) + b_neigh
    if w_self is not None:
        out = out + jnp.einsum("bnf,of->bno", x, w_self)
    return out


if __name__ == "__main__":
    key = jax.random.PRNGKey(0)
    k_x, k_adj, k_wn, k_b, k_ws = jax.random.split(key, 5)

    B, N, F_in, F_out = 2, 16, 32, 64

    x = jax.random.normal(k_x, (B, N, F_in), dtype=jnp.float32)
    adj = jax.random.uniform(k_adj, (N, N), dtype=jnp.float32)
    adj = adj / jnp.sum(adj, axis=-1, keepdims=True)    # row-normalized adjacency

    bound = 1.0 / (F_in ** 0.5)
    w_neigh = jax.random.uniform(k_wn, (F_out, F_in), minval=-bound, maxval=bound,
                                 dtype=jnp.float32)
    b_neigh = jax.random.uniform(k_b, (F_out,), minval=-bound, maxval=bound,
                                 dtype=jnp.float32)
    w_self = jax.random.uniform(k_ws, (F_out, F_in), minval=-bound, maxval=bound,
                                dtype=jnp.float32)

    ref_gcn = _reference(x, adj, w_neigh, b_neigh)
    ref_ws = _reference(x, adj, w_neigh, b_neigh, w_self=w_self)

    # gcn=True path (no weight_self), exact f32 compute.
    out_gcn = batch_gcn_conv(x, adj, w_neigh, b_neigh, compute_dtype=jnp.float32)
    jax.block_until_ready(out_gcn)
    assert out_gcn.shape == (B, N, F_out)
    assert jnp.allclose(out_gcn, ref_gcn, atol=1e-4, rtol=1e-4)

    # gcn=False path (with weight_self), exact f32 compute.
    out_ws = batch_gcn_conv(x, adj, w_neigh, b_neigh, w_self=w_self,
                            compute_dtype=jnp.float32)
    jax.block_until_ready(out_ws)
    assert jnp.allclose(out_ws, ref_ws, atol=1e-4, rtol=1e-4)

    # Default bf16 MXU path (f32 accumulation / epilogue); looser tolerance.
    out_bf16 = batch_gcn_conv(x, adj, w_neigh, b_neigh, w_self=w_self)
    jax.block_until_ready(out_bf16)
    assert out_bf16.shape == (B, N, F_out)
    assert jnp.allclose(out_bf16, ref_ws, atol=5e-2, rtol=5e-2)

    print("KERNEL_OK")
</pallas_src>

<mosaic_0001>
module attributes {stable_mosaic.version = 11 : i64} {
  func.func @kernel(%arg0: i32, %arg1: i32, %arg2: memref<16x16xf32, #tpu.memory_space<vmem>>, %arg3: memref<16x256xf32, #tpu.memory_space<vmem>>, %arg4: memref<128x128xf32, #tpu.memory_space<vmem>>, %arg5: memref<1x128xf32, #tpu.memory_space<vmem>>, %arg6: memref<16x256xf32, #tpu.memory_space<vmem>>, %arg7: memref<16x256xf32, #tpu.memory_space<vmem>>) attributes {dimension_semantics = [#tpu.dimension_semantics<parallel>, #tpu.dimension_semantics<arbitrary>], iteration_bounds = array<i64: 1, 1>, scalar_prefetch = 0 : i64, scratch_operands = 1 : i64, tpu.core_type = #tpu.core_type<tc>, window_params = [{transform_indices = @transform_0, window_bounds = array<i64: 16, 16>}, {transform_indices = @transform_1, window_bounds = array<i64: 16, 256>}, {pipeline_mode = #tpu.pipeline_mode<synchronous>, transform_indices = @transform_2, window_bounds = array<i64: 128, 128>}, {pipeline_mode = #tpu.pipeline_mode<synchronous>, transform_indices = @transform_3, window_bounds = array<i64: 1, 128>}, {transform_indices = @transform_4, window_bounds = array<i64: 16, 256>}]} {
    %c0_i32 = arith.constant 0 : i32
    %0 = arith.cmpi eq, %arg1, %c0_i32 : i32
    %1 = arith.extui %0 : i1 to i32
    %c0_i32_0 = arith.constant 0 : i32
    %2 = arith.cmpi ne, %1, %c0_i32_0 : i32
    scf.if %2 {
      %cst_10 = arith.constant 0.000000e+00 : f32
      %12 = vector.broadcast %cst_10 : f32 to vector<16x256xf32>
      %c0_11 = arith.constant 0 : index
      %c0_12 = arith.constant 0 : index
      %13 = vector.load %arg7[%c0_11, %c0_12] : memref<16x256xf32, #tpu.memory_space<vmem>>, vector<16x256xf32>
      tpu.vector_store %arg7[%c0_11, %c0_12], %12 {strides = array<i32>} : memref<16x256xf32, #tpu.memory_space<vmem>>, vector<16x256xf32>,
    } else {
    }
    %c0 = arith.constant 0 : index
    %c0_1 = arith.constant 0 : index
    %3 = vector.load %arg7[%c0, %c0_1] : memref<16x256xf32, #tpu.memory_space<vmem>>, vector<16x256xf32>
    %c0_2 = arith.constant 0 : index
    %c0_3 = arith.constant 0 : index
    %4 = vector.load %arg2[%c0_2, %c0_3] : memref<16x16xf32, #tpu.memory_space<vmem>>, vector<16x16xf32>
    %c0_4 = arith.constant 0 : index
    %c0_5 = arith.constant 0 : index
    %5 = vector.load %arg3[%c0_4, %c0_5] : memref<16x256xf32, #tpu.memory_space<vmem>>, vector<16x256xf32>
    %cst = arith.constant dense<0.000000e+00> : vector<16x256xf32>
    %6 = tpu.matmul %4, %5, %cst {dimension_numbers = #tpu.dot_dimension_numbers<[1], [0], [0], [1], [0, 0, 1, 1], [], []>} : vector<16x16xf32>, vector<16x256xf32>, vector<16x256xf32> -> vector<16x256xf32>
    %7 = arith.addf %3, %6 : vector<16x256xf32>
    %c0_6 = arith.constant 0 : index
    %c0_7 = arith.constant 0 : index
    %8 = vector.load %arg7[%c0_6, %c0_7] : memref<16x256xf32, #tpu.memory_space<vmem>>, vector<16x256xf32>
    tpu.vector_store %arg7[%c0_6, %c0_7], %7 {strides = array<i32>} : memref<16x256xf32, #tpu.memory_space<vmem>>, vector<16x256xf32>,
    %c0_i32_8 = arith.constant 0 : i32
    %9 = arith.cmpi eq, %arg1, %c0_i32_8 : i32
    %10 = arith.extui %9 : i1 to i32
    %c0_i32_9 = arith.constant 0 : i32
    %11 = arith.cmpi ne, %10, %c0_i32_9 : i32
    scf.if %11 {
      %c0_10 = arith.constant 0 : index
      %c0_11 = arith.constant 0 : index
      %12 = vector.load %arg5[%c0_10, %c0_11] : memref<1x128xf32, #tpu.memory_space<vmem>>, vector<1x128xf32>
      %c0_12 = arith.constant 0 : index
      %c0_13 = arith.constant 0 : index
      %13 = vector.load %arg4[%c0_12, %c0_13] : memref<128x128xf32, #tpu.memory_space<vmem>>, vector<128x128xf32>
      %c0_14 = arith.constant 0 : index
      %c0_15 = arith.constant 0 : index
      %14 = vector.load %arg7[%c0_14, %c0_15] : memref<16x256xf32, #tpu.memory_space<vmem>>, vector<16x128xf32>
      %cst_16 = arith.constant dense<0.000000e+00> : vector<16x128xf32>
      %15 = tpu.matmul %14, %13, %cst_16 {dimension_numbers = #tpu.dot_dimension_numbers<[1], [0], [0], [1], [0, 0, 1, 1], [], []>} : vector<16x128xf32>, vector<128x128xf32>, vector<16x128xf32> -> vector<16x128xf32>
      %16 = vector.broadcast %12 : vector<1x128xf32> to vector<16x128xf32>
      %17 = arith.addf %15, %16 : vector<16x128xf32>
      %c0_17 = arith.constant 0 : index
      %c0_18 = arith.constant 0 : index
      %18 = vector.load %arg6[%c0_17, %c0_18] : memref<16x256xf32, #tpu.memory_space<vmem>>, vector<16x128xf32>
      tpu.vector_store %arg6[%c0_17, %c0_18], %17 {strides = array<i32>} : memref<16x256xf32, #tpu.memory_space<vmem>>, vector<16x128xf32>,
      %c0_19 = arith.constant 0 : index
      %c128 = arith.constant 128 : index
      %19 = vector.load %arg7[%c0_19, %c128] : memref<16x256xf32, #tpu.memory_space<vmem>>, vector<16x128xf32>
      %cst_20 = arith.constant dense<0.000000e+00> : vector<16x128xf32>
      %20 = tpu.matmul %19, %13, %cst_20 {dimension_numbers = #tpu.dot_dimension_numbers<[1], [0], [0], [1], [0, 0, 1, 1], [], []>} : vector<16x128xf32>, vector<128x128xf32>, vector<16x128xf32> -> vector<16x128xf32>
      %21 = vector.broadcast %12 : vector<1x128xf32> to vector<16x128xf32>
      %22 = arith.addf %20, %21 : vector<16x128xf32>
      %c0_21 = arith.constant 0 : index
      %c128_22 = arith.constant 128 : index
      %23 = vector.load %arg6[%c0_21, %c128_22] : memref<16x256xf32, #tpu.memory_space<vmem>>, vector<16x128xf32>
      tpu.vector_store %arg6[%c0_21, %c128_22], %22 {strides = array<i32>} : memref<16x256xf32, #tpu.memory_space<vmem>>, vector<16x128xf32>,
    } else {
    }
    return
  }
  func.func @transform_0(%arg0: i32, %arg1: i32) -> (i32, i32) {
    %c0_i32 = arith.constant 0 : i32
    return %arg0, %arg1 : i32, i32
  }
  func.func @transform_1(%arg0: i32, %arg1: i32) -> (i32, i32) {
    %c0_i32 = arith.constant 0 : i32
    %c0_i32_0 = arith.constant 0 : i32
    return %arg1, %c0_i32 : i32, i32
  }
  func.func @transform_2(%arg0: i32, %arg1: i32) -> (i32, i32) {
    %c0_i32 = arith.constant 0 : i32
    %c0_i32_0 = arith.constant 0 : i32
    %c0_i32_1 = arith.constant 0 : i32
    return %c0_i32, %c0_i32_0 : i32, i32
  }
  func.func @transform_3(%arg0: i32, %arg1: i32) -> (i32, i32) {
    %c0_i32 = arith.constant 0 : i32
    %c0_i32_0 = arith.constant 0 : i32
    %c0_i32_1 = arith.constant 0 : i32
    return %c0_i32, %c0_i32_0 : i32, i32
  }
  func.func @transform_4(%arg0: i32, %arg1: i32) -> (i32, i32) {
    %c0_i32 = arith.constant 0 : i32
    %c0_i32_0 = arith.constant 0 : i32
    return %arg0, %c0_i32 : i32, i32
  }
}

</mosaic_0001>

<bundles_post_ra>
// kernel: tpu_custom_call.1
= control target key start
LH: loop header
LB: loop body
LE: loop exit
PB: predicated region body
PF: predicated region fallthrough
CT: control target
= control target key end

     0   :  { %9 = vsyncpa [#allocation4], 0  ;;  %s744_s0 = inlined_call_operand.hbm [shape: f32[16,16], index: 0, kind: input, shape index: {}]   ;;  %s745_s1 = inlined_call_operand.hbm [shape: f32[16,256], index: 1, kind: input, shape index: {}]   ;;  %s746_s2 = inlined_call_operand.hbm [shape: f32[128,128], index: 2, kind: input, shape index: {}]   ;;  %s747_s3 = inlined_call_operand.vmem [shape: f32[1,128], index: 3, kind: input, shape index: {}]   ;;  %s748_s4 = inlined_call_operand.hbm [shape: f32[16,256], index: 4, kind: output, shape index: {}]  }
   0x1   :  { %10 = vsyncpa [#allocation7], 0 }
   0x2   :  { %11 = vsyncpa [#allocation5], 0  ;;  %s651_s15 = smov [#allocation6]   ;;  %s557_s19 = scalar_lea.hbm %s745_s1, 512 }
   0x3   :  { %s29_s16 = sshll.u32 %s651_s15, 4  ;;  %p558_p0 = scmp.ne.s32.totalorder %s745_s1, %s557_s19  ;;  %s30_s16 = int_to_ptr.vmem [resolvable:$true] %s29_s16 }
   0x4   :  { %p561_p1 = scmp.lt.u32.totalorder %s557_s19, %s745_s1 }
   0x6   :  { %p563_p2 = pnand %p561_p1, %p558_p0 }
   0x8   :  { %566 = shalt.err (!%p563_p2)
}
   0x9   :  { %s567_s24 = scalar_lea.vmem %s30_s16, 512  ;;  %p572_p4 = scmp.lt.s32.totalorder %s30_s16, %s30_s16 }
   0xa   :  { %p568_p3 = scmp.ne.s32.totalorder %s30_s16, %s567_s24  ;;  %p573_p5 = scmp.lt.s32.totalorder %s567_s24, %s567_s24 }
   0xc   :  { %p574_p6 = por %p573_p5, %p572_p4 }
   0xe   :  { %p575_p7 = pnand %p574_p6, %p568_p3 }
  0x10   :  { %578 = shalt.err (!%p575_p7)
}
  0x11   :  { %s652_s25 = smov 256   ;;  %s653_s26 = smov 16  }
  0x12   :  { %35 = dma.hbm_to_vmem [thread:$0]  %s745_s1, 512, %s30_s16, [#allocation7], %s652_s25, %s652_s25, %s653_s26  }
  0x13   :  { %s654_s29 = smov [#allocation3]   ;;  %s579_s7 = scalar_lea.hbm %s744_s0, 256 }
  0x14   :  { %s17_s30 = sshll.u32 %s654_s29, 4  ;;  %p580_p8 = scmp.ne.s32.totalorder %s744_s0, %s579_s7  ;;  %s18_s30 = int_to_ptr.vmem [resolvable:$true] %s17_s30 }
  0x15   :  { %p583_p9 = scmp.lt.u32.totalorder %s579_s7, %s744_s0 }
  0x17   :  { %p585_p10 = pnand %p583_p9, %p580_p8 }
  0x19   :  { %588 = shalt.err (!%p585_p10)
}
  0x1a   :  { %s589_s12 = scalar_lea.vmem %s18_s30, 256  ;;  %p594_p12 = scmp.lt.s32.totalorder %s18_s30, %s18_s30 }
  0x1b   :  { %p590_p11 = scmp.ne.s32.totalorder %s18_s30, %s589_s12  ;;  %p595_p13 = scmp.lt.s32.totalorder %s589_s12, %s589_s12 }
  0x1d   :  { %p596_p0 = por %p595_p13, %p594_p12 }
  0x1f   :  { %p597_p1 = pnand %p596_p0, %p590_p11 }
  0x21   :  { %600 = shalt.err (!%p597_p1)
}
  0x22   :  { %s655_s1 = smov 128   ;;  %s656_s13 = smov 8  }
  0x23   :  { %23 = dma.hbm_to_vmem [thread:$0]  %s744_s0, 256, %s18_s30, [#allocation4], %s655_s1, %s655_s1, %s656_s13  }
  0x24   :  { %s657_s16 = smov [#allocation8]   ;;  %s601_s20 = scalar_lea.hbm %s746_s2, 2048 }
  0x25   :  { %s41_s17 = sshll.u32 %s657_s16, 4  ;;  %p602_p2 = scmp.ne.s32.totalorder %s746_s2, %s601_s20  ;;  %s42_s17 = int_to_ptr.vmem [resolvable:$true] %s41_s17 }
  0x26   :  { %p605_p3 = scmp.lt.u32.totalorder %s601_s20, %s746_s2 }
  0x28   :  { %p607_p4 = pnand %p605_p3, %p602_p2 }
  0x2a   :  { %610 = shalt.err (!%p607_p4)
}
  0x2b   :  { %s611_s27 = scalar_lea.vmem %s42_s17, 2048  ;;  %p616_p6 = scmp.lt.s32.totalorder %s42_s17, %s42_s17 }
  0x2c   :  { %p612_p5 = scmp.ne.s32.totalorder %s42_s17, %s611_s27  ;;  %p617_p7 = scmp.lt.s32.totalorder %s611_s27, %s611_s27 }
  0x2e   :  { %p618_p8 = por %p617_p7, %p616_p6 }
  0x30   :  { %p619_p9 = pnand %p618_p8, %p612_p5 }
  0x32   :  { %622 = shalt.err (!%p619_p9)
}
  0x33   :  { %47 = dma.hbm_to_vmem [thread:$0]  %s746_s2, 2048, %s42_s17, [#allocation7], %s655_s1, %s655_s1, %s656_s13  }
  0x34   :  { %645 = dma.done.wait [#allocation4], 256  }
  0x35   :  { %646 = vsyncadd [#allocation4], 4294967040 }
  0x36   :  { %647 = dma.done.wait [#allocation7], 2560  }
  0x37   :  { %648 = vsyncadd [#allocation7], 4294964736  ;;  %v658_v0 = vmov 0.0   ;;  %v74_v1 = vld [vmem:[#allocation6 + $0x8] sm:$0xff]  ;;  %v76_v2 = vld [vmem:[#allocation6 + $0x18] sm:$0xff]  ;;  %vm77_vm0 = vcmask 130048  }
  0x38   :  { %148 = vmatprep.mubr.f32.mxu0 %v658_v0  ;;  %v73_v3 = vld [vmem:[#allocation6] sm:$0xff]  ;;  %v480_v4 = vpack.c.bf16 %v76_v2, %v74_v1  ;;  %v75_v5 = vld [vmem:[#allocation6 + $0x10] sm:$0xff]  ;;  %v174_v8 = vld [vmem:[#allocation8 + $0x8] sm:$0xff]  ;;  %s659_s30 = smov [#allocation9]  }
  0x39   :  { %v482_v6 = vpack.c.bf16 %v75_v5, %v73_v3  ;;  %v173_v7 = vld [vmem:[#allocation8] sm:$0xff]  ;;  %v175_v9 = vld [vmem:[#allocation8 + $0x10] sm:$0xff]  ;;  %v176_v11 = vld [vmem:[#allocation8 + $0x18] sm:$0xff]  ;;  %s358_s5 = sshll.u32 %s659_s30, 4  ;;  %s359_s5 = int_to_ptr.vmem [resolvable:$true] %s358_s5 }
  0x3a   :  { %481 = vmatprep.subr.bf16.mxu0 %v480_v4  ;;  %v484_v10 = vpack.c.bf16 %v174_v8, %v173_v7  ;;  %v71_v12 = vld [vmem:[#allocation3] sm:$0xff]  ;;  %v488_v13 = vpack.c.bf16 %v176_v11, %v175_v9  ;;  %v177_v14 = vld [vmem:[#allocation8 + $0x20] sm:$0xff]  ;;  %v178_v15 = vld [vmem:[#allocation8 + $0x28] sm:$0xff]  ;;  %s623_s6 = scalar_lea.vmem %s359_s5, 512  ;;  %p628_p11 = scmp.lt.s32.totalorder %s359_s5, %s359_s5 }
  0x3b   :  { %483 = vmatpush1.bf16.msra.mxu0 %v482_v6  ;;  %v492_v16 = vpack.c.bf16 %v178_v15, %v177_v14  ;;  %v72_v17 = vld [vmem:[#allocation3 + $0x8] sm:$0xff]  ;;  %v179_v18 = vld [vmem:[#allocation8 + $0x30] sm:$0xff]  ;;  %v181_v21 = vld [vmem:[#allocation8 + $0x40] sm:$0xff]  ;;  %p624_p10 = scmp.ne.s32.totalorder %s359_s5, %s623_s6  ;;  %p629_p12 = scmp.lt.s32.totalorder %s623_s6, %s623_s6 }
  0x3c   :  { %485 = vmatprep.subr.bf16.mxu1 %v484_v10  ;;  %517 = vmatprep.subr.bf16.mxu0 %v484_v10  ;;  %v180_v19 = vld [vmem:[#allocation8 + $0x38] sm:$0xff]  ;;  %v182_v22 = vld [vmem:[#allocation8 + $0x48] sm:$0xff]  ;;  %v183_v24 = vld [vmem:[#allocation8 + $0x50] sm:$0xff] }
  0x3d   :  { %487 = vmatpush3.bf16.msra.mxu1 %v484_v10  ;;  %v496_v20 = vpack.c.bf16 %v180_v19, %v179_v18  ;;  %v500_v23 = vpack.c.bf16 %v182_v22, %v181_v21  ;;  %v184_v25 = vld [vmem:[#allocation8 + $0x58] sm:$0xff]  ;;  %v185_v27 = vld [vmem:[#allocation8 + $0x60] sm:$0xff]  ;;  %v186_v28 = vld [vmem:[#allocation8 + $0x68] sm:$0xff]  ;;  %p630_p13 = por %p629_p12, %p628_p11 }
  0x3e   :  { %371 = vmatmul.mubr.msk.f32.vlgmr.msra.gmra.mrb[0].mxu0 %vm77_vm0, %v71_v12  ;;  %489 = vmatprep.subr.bf16.mxu1 %v488_v13  ;;  %v504_v26 = vpack.c.bf16 %v184_v25, %v183_v24  ;;  %v508_v29 = vpack.c.bf16 %v186_v28, %v185_v27  ;;  %v187_v30 = vld [vmem:[#allocation8 + $0x70] sm:$0xff]  ;;  %v188_v31 = vld [vmem:[#allocation8 + $0x78] sm:$0xff] }
  0x3f   :  { %154 = vmatprep.mubr.f32.mxu0 %v658_v0  ;;  %519 = vmatpush3.bf16.msra.mxu0 %v484_v10  ;;  %v512_v32 = vpack.c.bf16 %v188_v31, %v187_v30  ;;  %v373_v37 = vld [vmem:[%s747_s3] ss:$0 sm:$0xff]  ;;  %p631_p0 = pnand %p630_p13, %p624_p10 }
  0x40   :  { %521 = vmatprep.subr.bf16.mxu0 %v488_v13 }
  0x41   :  { %491 = vmatpush3.bf16.msra.mxu1 %v488_v13 }
  0x42   :  { %372 = vmatmul.mubr.msk.f32.gmra.mrb[2].mxu0 %vm77_vm0, %v72_v17  ;;  %493 = vmatprep.subr.bf16.mxu1 %v492_v16 }
  0x43   :  { %523 = vmatpush3.bf16.msra.mxu0 %v488_v13 }
  0x44   :  { %525 = vmatprep.subr.bf16.mxu0 %v492_v16 }
  0x45   :  { %495 = vmatpush3.bf16.msra.mxu1 %v492_v16 }
  0x46   :  { %497 = vmatprep.subr.bf16.mxu1 %v496_v20 }
  0x47   :  { %527 = vmatpush3.bf16.msra.mxu0 %v492_v16 }
  0x48   :  { %529 = vmatprep.subr.bf16.mxu0 %v496_v20 }
  0x49   :  { %499 = vmatpush3.bf16.msra.mxu1 %v496_v20 }
  0x4a   :  { %501 = vmatprep.subr.bf16.mxu1 %v500_v23 }
  0x4b   :  { %531 = vmatpush3.bf16.msra.mxu0 %v496_v20 }
  0x4c   :  { %533 = vmatprep.subr.bf16.mxu0 %v500_v23 }
  0x4d   :  { %503 = vmatpush3.bf16.msra.mxu1 %v500_v23 }
  0x4e   :  { %505 = vmatprep.subr.bf16.mxu1 %v504_v26 }
  0x4f   :  { %535 = vmatpush3.bf16.msra.mxu0 %v500_v23 }
  0x50   :  { %537 = vmatprep.subr.bf16.mxu0 %v504_v26 }
  0x51   :  { %507 = vmatpush3.bf16.msra.mxu1 %v504_v26 }
  0x52   :  { %509 = vmatprep.subr.bf16.mxu1 %v508_v29 }
  0x53   :  { %539 = vmatpush3.bf16.msra.mxu0 %v504_v26 }
  0x54   :  { %541 = vmatprep.subr.bf16.mxu0 %v508_v29 }
  0x55   :  { %511 = vmatpush3.bf16.msra.mxu1 %v508_v29 }
  0x56   :  { %513 = vmatprep.subr.bf16.mxu1 %v512_v32 }
  0x57   :  { %543 = vmatpush3.bf16.msra.mxu0 %v508_v29 }
  0x58   :  { %545 = vmatprep.subr.bf16.mxu0 %v512_v32 }
  0x59   :  { %515 = vmatpush3.bf16.msra.mxu1 %v512_v32 }
  0x5b   :  { %547 = vmatpush3.bf16.msra.mxu0 %v512_v32 }
 0x111   :  { %v150_v33 = vpop.f32.mrb[0].mxu0 }
 0x112   :  { %v152_v34 = vpop.f32.mrb[1].mxu0  ;;  %442 = vmatprep.mubr.f32.mxu1 %v150_v33 }
 0x113   :  { %477 = vmatprep.mubr.f32.mxu0 %v152_v34 }
 0x115   :  { %v156_v35 = vpop.f32.mrb[2].mxu0 }
 0x116   :  { %v158_v36 = vpop.f32.mrb[3].mxu0  ;;  %443 = vmatmul.mubr.f32.vlgmr.msra.gmra.mrb[0].mxu1 %v156_v35 }
 0x117   :  { %478 = vmatmul.mubr.f32.vlgmr.msra.gmra.mrb[4].mxu0 %v158_v36 }
 0x1e9   :  { %v444_v38 = vpop.f32.mrb[0].mxu1 }
 0x1ea   :  { %v269_v39 = vadd.f32 %v444_v38, %v373_v37  ;;  %v263_v40 = vpop.f32.mrb[1].mxu1  ;;  %v479_v41 = vpop.f32.mrb[4].mxu0 }
 0x1eb   :  { %v264_v42 = vadd.f32 %v373_v37, %v263_v40  ;;  %v348_v43 = vadd.f32 %v479_v41, %v373_v37  ;;  %v342_v44 = vpop.f32.mrb[5].mxu0 }
 0x1ec   :  { %273 = vst [vmem:[#allocation9 + $0x10] sm:$0xff] %v269_v39  ;;  %v343_v45 = vadd.f32 %v373_v37, %v342_v44 }
 0x1ed   :  { %272 = vst [vmem:[#allocation9] sm:$0xff] %v264_v42  ;;  %352 = vst [vmem:[#allocation9 + $0x18] sm:$0xff] %v348_v43 }
 0x1ee   :  { %351 = vst [vmem:[#allocation9 + $0x8] sm:$0xff] %v343_v45 }
 0x1ef   :  { %634 = shalt.err (!%p631_p0)
}
 0x1f0   :  { %s635_s8 = scalar_lea.hbm %s748_s4, 512 }
 0x1f1   :  { %p636_p1 = scmp.ne.s32.totalorder %s748_s4, %s635_s8  ;;  %p639_p2 = scmp.lt.u32.totalorder %s635_s8, %s748_s4 }
 0x1f3   :  { %p641_p3 = pnand %p639_p2, %p636_p1 }
 0x1f5   :  { %644 = shalt.err (!%p641_p3)
}
 0x1f6   :  { %364 = dma.vmem_to_hbm [thread:$0]  %s359_s5, 512, %s748_s4, [#allocation5], %s652_s25, %s652_s25, %s653_s26  }
 0x1f7   :  { %649 = dma.done.wait [#allocation5], 512  }
 0x1f8   :  { %650 = vsyncadd [#allocation5], 4294966784 }
 0x1f9   :  { %368 = vsyncpa [#allocation4], 1 }
 0x1fa   :  { %369 = vsyncpa [#allocation7], 1 }
 0x1fb   :  { %370 = vsyncpa [#allocation5], 1 }

</bundles_post_ra>
